<compile_context>
chip_gen: v5e
topology: v5e:2x2
jax: 0.10.0
libtpu: 0.0.40
codegen_flags: <defaults>
</compile_context>

<pallas_src>
import functools

import jax
import jax.numpy as jnp
from jax.experimental import pallas as pl
from jax.experimental.pallas import tpu as pltpu


def _beta_actor_kernel(
    state_ref,            # [TB, S]   f32
    w1_ref, b1_ref,       # [S, H] (f32 or bf16), [1, H] f32
    w2_ref, b2_ref,       # [H, H] (f32 or bf16), [1, H] f32
    wh_ref, bh_ref,       # [H, Np] (f32 or bf16), [1, Np] f32  (fused alpha|beta head)
    out_ref,              # [TB, Np]  f32  (alpha|beta concatenated on the lane axis)
):
    cdt = w1_ref.dtype                     # compute dtype for the hidden path
    x = state_ref[...].astype(cdt)

    # layer 1: linear + tanh (MXU matmul w/ f32 accumulate; tanh on cdt hits the EUP)
    z1 = (jnp.dot(x, w1_ref[...], preferred_element_type=jnp.float32)
          + b1_ref[...]).astype(cdt)
    a1 = jnp.tanh(z1)

    # layer 2: linear + tanh
    z2 = (jnp.dot(a1, w2_ref[...], preferred_element_type=jnp.float32)
          + b2_ref[...]).astype(cdt)
    a2 = jnp.tanh(z2)

    # fused alpha/beta head: one matmul, one lane-dense (unmasked) store.
    zh = jnp.dot(a2, wh_ref[...], preferred_element_type=jnp.float32) + bh_ref[...]
    # softplus(z) + 1, numerically stable via logaddexp(z, 0); always f32.
    out_ref[...] = jnp.logaddexp(zh, 0.0) + 1.0


def _round_up(x, m):
    return ((x + m - 1) // m) * m


def _device_kind():
    try:
        return jax.devices()[0].device_kind.lower()
    except Exception:
        return ""


def device_defaults():
    """(use_bf16_hidden_path, block_b) based on the TPU generation."""
    kind = _device_kind()
    use_bf16 = any(tag in kind for tag in ("v6", "v7", "7x"))   # bf16 VPU/EUP chips only
    block_b = 256 if "v5" in kind else 512
    return use_bf16, block_b


def prepare_params(params, *, use_bf16):
    """One-time param prep (outside the hot path): fuse + lane-pad the two heads,
    cast hidden-path weights to the compute dtype. Biases stay f32."""
    w_head = jnp.concatenate([params["wa"], params["wb"]], axis=1)   # [H, 2A]
    b_head = jnp.concatenate([params["ba"], params["bb"]], axis=1)   # [1, 2A]
    n_valid = w_head.shape[1]
    n_pad = max(128, _round_up(n_valid, 128))                        # lane-dense width
    if n_pad != n_valid:
        w_head = jnp.pad(w_head, ((0, 0), (0, n_pad - n_valid)))
        b_head = jnp.pad(b_head, ((0, 0), (0, n_pad - n_valid)))
    wdt = jnp.bfloat16 if use_bf16 else jnp.float32
    return dict(
        w1=params["w1"].astype(wdt), b1=params["b1"].astype(jnp.float32),
        w2=params["w2"].astype(wdt), b2=params["b2"].astype(jnp.float32),
        w_head=w_head.astype(wdt),   b_head=b_head.astype(jnp.float32),
    )


@functools.partial(
    jax.jit, static_argnames=("action_dim", "block_b", "single_buffer_weights"))
def beta_actor_forward(state, prep, *, action_dim, block_b=512,
                       single_buffer_weights=True):
    """state: [B, state_dim] f32; prep: output of prepare_params.
    Returns (alpha, beta), each [B, action_dim] float32."""
    B, S = state.shape
    H = prep["w1"].shape[1]
    n_pad = prep["w_head"].shape[1]
    n_valid = 2 * action_dim

    # ---- batch tiling: >= 2 tiles whenever B >= 16 so dimension_semantics=("parallel",)
    # actually shards work across both TensorCores on v7x; tile is a sublane multiple.
    b8 = _round_up(B, 8)
    half = _round_up(-(-b8 // 2), 8)            # round_up(ceil(B/2), 8)
    tb = max(8, min(block_b, half))
    b_pad = _round_up(B, tb)
    state_p = state if b_pad == B else jnp.pad(state, ((0, b_pad - B), (0, 0)))
    n_tiles = b_pad // tb

    # ---- explicit VMEM budget: double-buffered streamed tiles + single-buffered weights.
    w_item = jnp.dtype(prep["w1"].dtype).itemsize
    weight_bytes = (S * H + H * H + H * n_pad) * w_item + (2 * H + n_pad) * 4
    io_bytes = 2 * (tb * S + tb * n_pad) * 4
    vmem_limit = int(max(16 << 20, min(96 << 20, 2 * (weight_bytes + io_bytes) + (4 << 20))))

    cost = pl.CostEstimate(
        flops=2 * b_pad * (S * H + H * H + H * n_pad),
        # ~2 EUP ops per tanh element (2 layers) + exp & log1p per softplus element.
        transcendentals=4 * b_pad * H + 2 * b_pad * n_pad,
        bytes_accessed=weight_bytes + 4 * b_pad * (S + n_pad),
    )

    def resident(shape):
        # Constant index_map -> block never changes; single-buffer it to halve weight VMEM.
        kwargs = {"pipeline_mode": pl.Buffered(1)} if single_buffer_weights else {}
        return pl.BlockSpec(shape, lambda i: tuple(0 for _ in shape), **kwargs)

    out = pl.pallas_call(
        _beta_actor_kernel,
        out_shape=jax.ShapeDtypeStruct((b_pad, n_pad), jnp.float32),
        grid=(n_tiles,),
        in_specs=[
            pl.BlockSpec((tb, S), lambda i: (i, 0)),   # state: streamed over batch tiles
            resident((S, H)), resident((1, H)),        # layer-1 weights (VMEM-resident)
            resident((H, H)), resident((1, H)),        # layer-2 weights (VMEM-resident)
            resident((H, n_pad)), resident((1, n_pad)),# fused head weights (VMEM-resident)
        ],
        out_specs=pl.BlockSpec((tb, n_pad), lambda i: (i, 0)),
        compiler_params=pltpu.CompilerParams(
            dimension_semantics=("parallel",),         # shard batch tiles across TCs (v7x)
            vmem_limit_bytes=vmem_limit,
        ),
        cost_estimate=cost,
    )(
        state_p,
        prep["w1"], prep["b1"],
        prep["w2"], prep["b2"],
        prep["w_head"], prep["b_head"],
    )

    out = out[:B, :n_valid]
    alpha = out[:, :action_dim]
    beta = out[:, action_dim:]
    return alpha, beta


def init_params(key, state_dim, action_dim, net_width):
    """Deterministic init; weights stored as [in, out] (transposed vs torch)."""
    ks = jax.random.split(key, 8)

    def lin(kw, kb, fan_in, fan_out):
        # mimic torch.nn.Linear default: U(-1/sqrt(fan_in), 1/sqrt(fan_in))
        bound = 1.0 / jnp.sqrt(fan_in)
        w = jax.random.uniform(kw, (fan_in, fan_out), jnp.float32, -bound, bound)
        b = jax.random.uniform(kb, (1, fan_out), jnp.float32, -bound, bound)
        return w, b

    w1, b1 = lin(ks[0], ks[1], state_dim, net_width)
    w2, b2 = lin(ks[2], ks[3], net_width, net_width)
    wa, ba = lin(ks[4], ks[5], net_width, action_dim)
    wb, bb = lin(ks[6], ks[7], net_width, action_dim)
    return dict(w1=w1, b1=b1, w2=w2, b2=b2, wa=wa, ba=ba, wb=wb, bb=bb)


def reference_forward(state, p):
    a = jnp.tanh(state @ p["w1"] + p["b1"])
    a = jnp.tanh(a @ p["w2"] + p["b2"])
    alpha = jax.nn.softplus(a @ p["wa"] + p["ba"]) + 1.0
    beta = jax.nn.softplus(a @ p["wb"] + p["bb"]) + 1.0
    return alpha, beta


if __name__ == "__main__":
    state_dim, action_dim, net_width = 16, 8, 32
    batch = 16   # >= 16 so the parallel grid splits into >= 2 tiles

    key = jax.random.PRNGKey(0)
    k_state, k_params = jax.random.split(key)
    state = jax.random.normal(k_state, (batch, state_dim), jnp.float32)
    params = init_params(k_params, state_dim, action_dim, net_width)

    use_bf16, block_b = device_defaults()
    prep = prepare_params(params, use_bf16=use_bf16)

    try:
        alpha, beta = beta_actor_forward(state, prep, action_dim=action_dim,
                                         block_b=block_b)
        jax.block_until_ready((alpha, beta))
    except Exception:
        # Fallback if this JAX build rejects pipeline_mode=pl.Buffered(1).
        alpha, beta = beta_actor_forward(state, prep, action_dim=action_dim,
                                         block_b=block_b,
                                         single_buffer_weights=False)
        jax.block_until_ready((alpha, beta))

    alpha_ref, beta_ref = reference_forward(state, params)
    # bf16 hidden path (v6e/v7x) trades a little precision for EUP/VMEM savings.
    atol = rtol = 3e-2 if use_bf16 else 1e-5
    assert alpha.shape == (batch, action_dim) and beta.shape == (batch, action_dim)
    assert jnp.allclose(alpha, alpha_ref, atol=atol, rtol=rtol)
    assert jnp.allclose(beta, beta_ref, atol=atol, rtol=rtol)
    # alpha/beta of a Beta distribution must be > 1 here by construction
    assert bool(jnp.all(alpha > 1.0)) and bool(jnp.all(beta > 1.0))

    print("KERNEL_OK")
</pallas_src>

<mosaic_0001>
module attributes {stable_mosaic.version = 11 : i64} {
  func.func @_beta_actor_kernel(%arg0: i32, %arg1: memref<8x16xf32, #tpu.memory_space<vmem>>, %arg2: memref<16x32xf32, #tpu.memory_space<vmem>>, %arg3: memref<1x32xf32, #tpu.memory_space<vmem>>, %arg4: memref<32x32xf32, #tpu.memory_space<vmem>>, %arg5: memref<1x32xf32, #tpu.memory_space<vmem>>, %arg6: memref<32x128xf32, #tpu.memory_space<vmem>>, %arg7: memref<1x128xf32, #tpu.memory_space<vmem>>, %arg8: memref<8x128xf32, #tpu.memory_space<vmem>>) attributes {dimension_semantics = [#tpu.dimension_semantics<parallel>], iteration_bounds = array<i64: 2>, scalar_prefetch = 0 : i64, scratch_operands = 0 : i64, tpu.core_type = #tpu.core_type<tc>, window_params = [{transform_indices = @transform_0, window_bounds = array<i64: 8, 16>}, {pipeline_mode = #tpu.pipeline_mode<synchronous>, transform_indices = @transform_1, window_bounds = array<i64: 16, 32>}, {pipeline_mode = #tpu.pipeline_mode<synchronous>, transform_indices = @transform_2, window_bounds = array<i64: 1, 32>}, {pipeline_mode = #tpu.pipeline_mode<synchronous>, transform_indices = @transform_3, window_bounds = array<i64: 32, 32>}, {pipeline_mode = #tpu.pipeline_mode<synchronous>, transform_indices = @transform_4, window_bounds = array<i64: 1, 32>}, {pipeline_mode = #tpu.pipeline_mode<synchronous>, transform_indices = @transform_5, window_bounds = array<i64: 32, 128>}, {pipeline_mode = #tpu.pipeline_mode<synchronous>, transform_indices = @transform_6, window_bounds = array<i64: 1, 128>}, {transform_indices = @transform_7, window_bounds = array<i64: 8, 128>}]} {
    %c0 = arith.constant 0 : index
    %c0_0 = arith.constant 0 : index
    %0 = vector.load %arg1[%c0, %c0_0] : memref<8x16xf32, #tpu.memory_space<vmem>>, vector<8x16xf32>
    %c0_1 = arith.constant 0 : index
    %c0_2 = arith.constant 0 : index
    %1 = vector.load %arg2[%c0_1, %c0_2] : memref<16x32xf32, #tpu.memory_space<vmem>>, vector<16x32xf32>
    %cst = arith.constant dense<0.000000e+00> : vector<8x32xf32>
    %2 = tpu.matmul %0, %1, %cst {dimension_numbers = #tpu.dot_dimension_numbers<[1], [0], [0], [1], [0, 0, 1, 1], [], []>} : vector<8x16xf32>, vector<16x32xf32>, vector<8x32xf32> -> vector<8x32xf32>
    %c0_3 = arith.constant 0 : index
    %c0_4 = arith.constant 0 : index
    %3 = vector.load %arg3[%c0_3, %c0_4] : memref<1x32xf32, #tpu.memory_space<vmem>>, vector<1x32xf32>
    %4 = vector.broadcast %3 : vector<1x32xf32> to vector<8x32xf32>
    %5 = arith.addf %2, %4 : vector<8x32xf32>
    %6 = math.tanh %5 : vector<8x32xf32>
    %c0_5 = arith.constant 0 : index
    %c0_6 = arith.constant 0 : index
    %7 = vector.load %arg4[%c0_5, %c0_6] : memref<32x32xf32, #tpu.memory_space<vmem>>, vector<32x32xf32>
    %cst_7 = arith.constant dense<0.000000e+00> : vector<8x32xf32>
    %8 = tpu.matmul %6, %7, %cst_7 {dimension_numbers = #tpu.dot_dimension_numbers<[1], [0], [0], [1], [0, 0, 1, 1], [], []>} : vector<8x32xf32>, vector<32x32xf32>, vector<8x32xf32> -> vector<8x32xf32>
    %c0_8 = arith.constant 0 : index
    %c0_9 = arith.constant 0 : index
    %9 = vector.load %arg5[%c0_8, %c0_9] : memref<1x32xf32, #tpu.memory_space<vmem>>, vector<1x32xf32>
    %10 = vector.broadcast %9 : vector<1x32xf32> to vector<8x32xf32>
    %11 = arith.addf %8, %10 : vector<8x32xf32>
    %12 = math.tanh %11 : vector<8x32xf32>
    %c0_10 = arith.constant 0 : index
    %c0_11 = arith.constant 0 : index
    %13 = vector.load %arg6[%c0_10, %c0_11] : memref<32x128xf32, #tpu.memory_space<vmem>>, vector<32x128xf32>
    %cst_12 = arith.constant dense<0.000000e+00> : vector<8x128xf32>
    %14 = tpu.matmul %12, %13, %cst_12 {dimension_numbers = #tpu.dot_dimension_numbers<[1], [0], [0], [1], [0, 0, 1, 1], [], []>} : vector<8x32xf32>, vector<32x128xf32>, vector<8x128xf32> -> vector<8x128xf32>
    %c0_13 = arith.constant 0 : index
    %c0_14 = arith.constant 0 : index
    %15 = vector.load %arg7[%c0_13, %c0_14] : memref<1x128xf32, #tpu.memory_space<vmem>>, vector<1x128xf32>
    %16 = vector.broadcast %15 : vector<1x128xf32> to vector<8x128xf32>
    %17 = arith.addf %14, %16 : vector<8x128xf32>
    %cst_15 = arith.constant 0.000000e+00 : f32
    %18 = vector.broadcast %cst_15 : f32 to vector<8x128xf32>
    %19 = arith.maximumf %17, %18 : vector<8x128xf32>
    %20 = vector.broadcast %cst_15 : f32 to vector<8x128xf32>
    %21 = arith.subf %17, %20 : vector<8x128xf32>
    %22 = arith.cmpf one, %21, %21 : vector<8x128xf32>
    %23 = vector.broadcast %cst_15 : f32 to vector<8x128xf32>
    %24 = arith.addf %17, %23 : vector<8x128xf32>
    %25 = math.absf %21 : vector<8x128xf32>
    %cst_16 = arith.constant 0.000000e+00 : f32
    %26 = vector.broadcast %cst_16 : f32 to vector<8x128xf32>
    %27 = arith.subf %26, %25 : vector<8x128xf32>
    %28 = math.exp %27 : vector<8x128xf32>
    %29 = math.log1p %28 : vector<8x128xf32>
    %30 = arith.addf %19, %29 : vector<8x128xf32>
    %31 = arith.select %22, %24, %30 : vector<8x128xi1>, vector<8x128xf32>
    %cst_17 = arith.constant 1.000000e+00 : f32
    %32 = vector.broadcast %cst_17 : f32 to vector<8x128xf32>
    %33 = arith.addf %31, %32 : vector<8x128xf32>
    %c0_18 = arith.constant 0 : index
    %c0_19 = arith.constant 0 : index
    %34 = vector.load %arg8[%c0_18, %c0_19] : memref<8x128xf32, #tpu.memory_space<vmem>>, vector<8x128xf32>
    tpu.vector_store %arg8[%c0_18, %c0_19], %33 {strides = array<i32>} : memref<8x128xf32, #tpu.memory_space<vmem>>, vector<8x128xf32>,
    return
  }
  func.func @transform_0(%arg0: i32) -> (i32, i32) {
    %c0_i32 = arith.constant 0 : i32
    %c0_i32_0 = arith.constant 0 : i32
    return %arg0, %c0_i32 : i32, i32
  }
  func.func @transform_1(%arg0: i32) -> (i32, i32) {
    %c0_i32 = arith.constant 0 : i32
    %c0_i32_0 = arith.constant 0 : i32
    %c0_i32_1 = arith.constant 0 : i32
    return %c0_i32, %c0_i32_0 : i32, i32
  }
  func.func @transform_2(%arg0: i32) -> (i32, i32) {
    %c0_i32 = arith.constant 0 : i32
    %c0_i32_0 = arith.constant 0 : i32
    %c0_i32_1 = arith.constant 0 : i32
    return %c0_i32, %c0_i32_0 : i32, i32
  }
  func.func @transform_3(%arg0: i32) -> (i32, i32) {
    %c0_i32 = arith.constant 0 : i32
    %c0_i32_0 = arith.constant 0 : i32
    %c0_i32_1 = arith.constant 0 : i32
    return %c0_i32, %c0_i32_0 : i32, i32
  }
  func.func @transform_4(%arg0: i32) -> (i32, i32) {
    %c0_i32 = arith.constant 0 : i32
    %c0_i32_0 = arith.constant 0 : i32
    %c0_i32_1 = arith.constant 0 : i32
    return %c0_i32, %c0_i32_0 : i32, i32
  }
  func.func @transform_5(%arg0: i32) -> (i32, i32) {
    %c0_i32 = arith.constant 0 : i32
    %c0_i32_0 = arith.constant 0 : i32
    %c0_i32_1 = arith.constant 0 : i32
    return %c0_i32, %c0_i32_0 : i32, i32
  }
  func.func @transform_6(%arg0: i32) -> (i32, i32) {
    %c0_i32 = arith.constant 0 : i32
    %c0_i32_0 = arith.constant 0 : i32
    %c0_i32_1 = arith.constant 0 : i32
    return %c0_i32, %c0_i32_0 : i32, i32
  }
  func.func @transform_7(%arg0: i32) -> (i32, i32) {
    %c0_i32 = arith.constant 0 : i32
    %c0_i32_0 = arith.constant 0 : i32
    return %arg0, %c0_i32 : i32, i32
  }
}

module attributes {stable_mosaic.version = 11 : i64} {
  func.func @_beta_actor_kernel(%arg0: i32, %arg1: memref<8x16xf32, #tpu.memory_space<vmem>>, %arg2: memref<16x32xf32, #tpu.memory_space<vmem>>, %arg3: memref<1x32xf32, #tpu.memory_space<vmem>>, %arg4: memref<32x32xf32, #tpu.memory_space<vmem>>, %arg5: memref<1x32xf32, #tpu.memory_space<vmem>>, %arg6: memref<32x128xf32, #tpu.memory_space<vmem>>, %arg7: memref<1x128xf32, #tpu.memory_space<vmem>>, %arg8: memref<8x128xf32, #tpu.memory_space<vmem>>) attributes {dimension_semantics = [#tpu.dimension_semantics<parallel>], iteration_bounds = array<i64: 2>, scalar_prefetch = 0 : i64, scratch_operands = 0 : i64, tpu.core_type = #tpu.core_type<tc>, window_params = [{transform_indices = @transform_0, window_bounds = array<i64: 8, 16>}, {pipeline_mode = #tpu.pipeline_mode<synchronous>, transform_indices = @transform_1, window_bounds = array<i64: 16, 32>}, {pipeline_mode = #tpu.pipeline_mode<synchronous>, transform_indices = @transform_2, window_bounds = array<i64: 1, 32>}, {pipeline_mode = #tpu.pipeline_mode<synchronous>, transform_indices = @transform_3, window_bounds = array<i64: 32, 32>}, {pipeline_mode = #tpu.pipeline_mode<synchronous>, transform_indices = @transform_4, window_bounds = array<i64: 1, 32>}, {pipeline_mode = #tpu.pipeline_mode<synchronous>, transform_indices = @transform_5, window_bounds = array<i64: 32, 128>}, {pipeline_mode = #tpu.pipeline_mode<synchronous>, transform_indices = @transform_6, window_bounds = array<i64: 1, 128>}, {transform_indices = @transform_7, window_bounds = array<i64: 8, 128>}]} {
    %c0 = arith.constant 0 : index
    %c0_0 = arith.constant 0 : index
    %0 = vector.load %arg1[%c0, %c0_0] : memref<8x16xf32, #tpu.memory_space<vmem>>, vector<8x16xf32>
    %c0_1 = arith.constant 0 : index
    %c0_2 = arith.constant 0 : index
    %1 = vector.load %arg2[%c0_1, %c0_2] : memref<16x32xf32, #tpu.memory_space<vmem>>, vector<16x32xf32>
    %cst = arith.constant dense<0.000000e+00> : vector<8x32xf32>
    %2 = tpu.matmul %0, %1, %cst {dimension_numbers = #tpu.dot_dimension_numbers<[1], [0], [0], [1], [0, 0, 1, 1], [], []>} : vector<8x16xf32>, vector<16x32xf32>, vector<8x32xf32> -> vector<8x32xf32>
    %c0_3 = arith.constant 0 : index
    %c0_4 = arith.constant 0 : index
    %3 = vector.load %arg3[%c0_3, %c0_4] : memref<1x32xf32, #tpu.memory_space<vmem>>, vector<1x32xf32>
    %4 = vector.broadcast %3 : vector<1x32xf32> to vector<8x32xf32>
    %5 = arith.addf %2, %4 : vector<8x32xf32>
    %6 = math.tanh %5 : vector<8x32xf32>
    %c0_5 = arith.constant 0 : index
    %c0_6 = arith.constant 0 : index
    %7 = vector.load %arg4[%c0_5, %c0_6] : memref<32x32xf32, #tpu.memory_space<vmem>>, vector<32x32xf32>
    %cst_7 = arith.constant dense<0.000000e+00> : vector<8x32xf32>
    %8 = tpu.matmul %6, %7, %cst_7 {dimension_numbers = #tpu.dot_dimension_numbers<[1], [0], [0], [1], [0, 0, 1, 1], [], []>} : vector<8x32xf32>, vector<32x32xf32>, vector<8x32xf32> -> vector<8x32xf32>
    %c0_8 = arith.constant 0 : index
    %c0_9 = arith.constant 0 : index
    %9 = vector.load %arg5[%c0_8, %c0_9] : memref<1x32xf32, #tpu.memory_space<vmem>>, vector<1x32xf32>
    %10 = vector.broadcast %9 : vector<1x32xf32> to vector<8x32xf32>
    %11 = arith.addf %8, %10 : vector<8x32xf32>
    %12 = math.tanh %11 : vector<8x32xf32>
    %c0_10 = arith.constant 0 : index
    %c0_11 = arith.constant 0 : index
    %13 = vector.load %arg6[%c0_10, %c0_11] : memref<32x128xf32, #tpu.memory_space<vmem>>, vector<32x128xf32>
    %cst_12 = arith.constant dense<0.000000e+00> : vector<8x128xf32>
    %14 = tpu.matmul %12, %13, %cst_12 {dimension_numbers = #tpu.dot_dimension_numbers<[1], [0], [0], [1], [0, 0, 1, 1], [], []>} : vector<8x32xf32>, vector<32x128xf32>, vector<8x128xf32> -> vector<8x128xf32>
    %c0_13 = arith.constant 0 : index
    %c0_14 = arith.constant 0 : index
    %15 = vector.load %arg7[%c0_13, %c0_14] : memref<1x128xf32, #tpu.memory_space<vmem>>, vector<1x128xf32>
    %16 = vector.broadcast %15 : vector<1x128xf32> to vector<8x128xf32>
    %17 = arith.addf %14, %16 : vector<8x128xf32>
    %cst_15 = arith.constant 0.000000e+00 : f32
    %18 = vector.broadcast %cst_15 : f32 to vector<8x128xf32>
    %19 = arith.maximumf %17, %18 : vector<8x128xf32>
    %20 = vector.broadcast %cst_15 : f32 to vector<8x128xf32>
    %21 = arith.subf %17, %20 : vector<8x128xf32>
    %22 = arith.cmpf one, %21, %21 : vector<8x128xf32>
    %23 = vector.broadcast %cst_15 : f32 to vector<8x128xf32>
    %24 = arith.addf %17, %23 : vector<8x128xf32>
    %25 = math.absf %21 : vector<8x128xf32>
    %cst_16 = arith.constant 0.000000e+00 : f32
    %26 = vector.broadcast %cst_16 : f32 to vector<8x128xf32>
    %27 = arith.subf %26, %25 : vector<8x128xf32>
    %28 = math.exp %27 : vector<8x128xf32>
    %29 = math.log1p %28 : vector<8x128xf32>
    %30 = arith.addf %19, %29 : vector<8x128xf32>
    %31 = arith.select %22, %24, %30 : vector<8x128xi1>, vector<8x128xf32>
    %cst_17 = arith.constant 1.000000e+00 : f32
    %32 = vector.broadcast %cst_17 : f32 to vector<8x128xf32>
    %33 = arith.addf %31, %32 : vector<8x128xf32>
    %c0_18 = arith.constant 0 : index
    %c0_19 = arith.constant 0 : index
    %34 = vector.load %arg8[%c0_18, %c0_19] : memref<8x128xf32, #tpu.memory_space<vmem>>, vector<8x128xf32>
    tpu.vector_store %arg8[%c0_18, %c0_19], %33 {strides = array<i32>} : memref<8x128xf32, #tpu.memory_space<vmem>>, vector<8x128xf32>,
    return
  }
  func.func @transform_0(%arg0: i32) -> (i32, i32) {
    %c0_i32 = arith.constant 0 : i32
    %c0_i32_0 = arith.constant 0 : i32
    return %arg0, %c0_i32 : i32, i32
  }
  func.func @transform_1(%arg0: i32) -> (i32, i32) {
    %c0_i32 = arith.constant 0 : i32
    %c0_i32_0 = arith.constant 0 : i32
    %c0_i32_1 = arith.constant 0 : i32
    return %c0_i32, %c0_i32_0 : i32, i32
  }
  func.func @transform_2(%arg0: i32) -> (i32, i32) {
    %c0_i32 = arith.constant 0 : i32
    %c0_i32_0 = arith.constant 0 : i32
    %c0_i32_1 = arith.constant 0 : i32
    return %c0_i32, %c0_i32_0 : i32, i32
  }
  func.func @transform_3(%arg0: i32) -> (i32, i32) {
    %c0_i32 = arith.constant 0 : i32
    %c0_i32_0 = arith.constant 0 : i32
    %c0_i32_1 = arith.constant 0 : i32
    return %c0_i32, %c0_i32_0 : i32, i32
  }
  func.func @transform_4(%arg0: i32) -> (i32, i32) {
    %c0_i32 = arith.constant 0 : i32
    %c0_i32_0 = arith.constant 0 : i32
    %c0_i32_1 = arith.constant 0 : i32
    return %c0_i32, %c0_i32_0 : i32, i32
  }
  func.func @transform_5(%arg0: i32) -> (i32, i32) {
    %c0_i32 = arith.constant 0 : i32
    %c0_i32_0 = arith.constant 0 : i32
    %c0_i32_1 = arith.constant 0 : i32
    return %c0_i32, %c0_i32_0 : i32, i32
  }
  func.func @transform_6(%arg0: i32) -> (i32, i32) {
    %c0_i32 = arith.constant 0 : i32
    %c0_i32_0 = arith.constant 0 : i32
    %c0_i32_1 = arith.constant 0 : i32
    return %c0_i32, %c0_i32_0 : i32, i32
  }
  func.func @transform_7(%arg0: i32) -> (i32, i32) {
    %c0_i32 = arith.constant 0 : i32
    %c0_i32_0 = arith.constant 0 : i32
    return %arg0, %c0_i32 : i32, i32
  }
}

</mosaic_0001>

<bundles_post_ra>
// kernel: beta_actor_forward.1
= control target key start
LH: loop header
LB: loop body
LE: loop exit
PB: predicated region body
PF: predicated region fallthrough
CT: control target
= control target key end

     0   :  { %12 = vsyncpa [#allocation3], 0  ;;  %s1072_s0 = inlined_call_operand.hbm [shape: f32[16,16], index: 0, kind: input, shape index: {}]   ;;  %s1073_s1 = inlined_call_operand.hbm [shape: f32[16,32], index: 1, kind: input, shape index: {}]   ;;  %s1074_s2 = inlined_call_operand.hbm [shape: f32[1,32], index: 2, kind: input, shape index: {}]   ;;  %s1075_s3 = inlined_call_operand.hbm [shape: f32[32,32], index: 3, kind: input, shape index: {}]   ;;  %s1076_s4 = inlined_call_operand.vmem [shape: f32[1,32], index: 4, kind: input, shape index: {}]   ;;  %s1077_s5 = inlined_call_operand.hbm [shape: f32[32,128], index: 5, kind: input, shape index: {}]   ;;  %s1078_s6 = inlined_call_operand.vmem [shape: f32[1,128], index: 6, kind: input, shape index: {}]   ;;  %s1079_s7 = inlined_call_operand.vmem [shape: f32[16,128], index: 7, kind: output, shape index: {}]  }
   0x1   :  { %14 = vsyncpa [#allocation3 + $0x1], 0 }
   0x2   :  { %15 = vsyncpa [#allocation5], 0 }
   0x3   :  { %16 = vsyncpa [#allocation8], 0  ;;  %s933_s24 = smov 0   ;;  %s935_s25 = smov 0  }
   0x4   :  { %s937_s26 = smov 0   ;;  %s939_s27 = smov 0  }
   0x5 LB: > { %s216_s30 = sshll.u32 %s1073_s1, 4  ;;  %s957_s8 = sadd.s32 4294967295, %s885_s27   ;;  %s885_s27 = sphi %s939_s27, %s1087_s27   ;;  %s881_s26 = sphi %s937_s26, %s1086_s26   ;;  %s877_s25 = sphi %s935_s25, %s1085_s25   ;;  %s873_s24 = sphi %s933_s24, %s1084_s24   ;;  %s217_s30 = int_to_ptr.hbm [resolvable:$true] %s216_s30 }
   0x6   : > { %p580_p0 = scmp.ge.s32.totalorder %s885_s27, 1  ;;  %p43_p1 = scmp.eq.s32.totalorder %s957_s8, 0 }
   0x7   : > { %p205_p2 = scmp.lt.s32.totalorder %s885_s27, 3  ;;  %s887_s10 = smov [#allocation4]  }
   0x8   : > { %s218_s11 = sshll.u32 %s887_s10, 4  ;;  %s242_s14 = sshll.u32 %s1075_s3, 4  ;;  %s219_s11 = int_to_ptr.vmem [resolvable:$true] %s218_s11  ;;  %s243_s14 = int_to_ptr.hbm [resolvable:$true] %s242_s14 }
   0x9   : > { %p962_p3 = pnand %p580_p0, %p205_p2  ;;  %s231_s18 = sshll.u32 %s1074_s2, 4  ;;  %s232_s18 = int_to_ptr.hbm [resolvable:$true] %s231_s18 }
   0xa   : > { %s888_s19 = smov [#allocation7]   ;;  %s889_s21 = smov 128  }
   0xb   : > { %p618_p4 = pneg %p962_p3  ;;  %s244_s20 = sshll.u32 %s888_s19, 4  ;;  %s245_s20 = int_to_ptr.vmem [resolvable:$true] %s244_s20 }
   0xc   : > { %s890_s22 = smov 8   ;;  %s259_s29 = sshll.u32 %s1077_s5, 4  ;;  %s260_s29 = int_to_ptr.hbm [resolvable:$true] %s259_s29 }
   0xd   : > { %p973_p5 = pnand %p618_p4, %p43_p1  ;;  %s891_s10 = smov [#allocation6]  }
   0xe   : > { %s233_s12 = sshll.u32 %s891_s10, 4  ;;  %s992_s13 = sadd.s32 1, %s885_s27   ;;  %s234_s12 = int_to_ptr.vmem [resolvable:$true] %s233_s12 }
   0xf   : > { %621 = dma.hbm_to_vmem [thread:$0]  (!%p973_p5), %s217_s30, 256, %s219_s11, [#allocation5], %s889_s21, %s889_s21, %s890_s22  }
  0x10   : > { %627 = dma.hbm_to_vmem [thread:$0]  (!%p973_p5), %s243_s14, 512, %s245_s20, [#allocation8], %s889_s21, %s889_s21, %s890_s22  }
  0x11   : > { %624 = dma.hbm_to_vmem [thread:$0]  (!%p973_p5), %s232_s18, 16, %s234_s12, [#allocation5]  }
  0x12   : > { %s892_s30 = smov [#allocation9]   ;;  %s26_s14 = ssub.s32 %s885_s27, %s992_s13 }
  0x13   : > { %s261_s11 = sshll.u32 %s892_s30, 4  ;;  %s29_s16 = sadd.s32 1, %s881_s26  ;;  %s262_s11 = int_to_ptr.vmem [resolvable:$true] %s261_s11 }
  0x14   : > { %630 = dma.hbm_to_vmem [thread:$0]  (!%p973_p5), %s260_s29, 512, %s262_s11, [#allocation8], %s889_s21, %s889_s21, %s890_s22  }
  0x15   : > { %p27_p6 = scmp.eq.s32.totalorder %s26_s14, 0  ;;  %p36_p7 = scmp.ne.s32.totalorder %s881_s26, %s877_s25 }
  0x16   : > { %p37_p8 = scmp.eq.s32.totalorder %s885_s27, 0  ;;  %p42_p9 = scmp.ne.s32.totalorder %s877_s25, %s873_s24 }
  0x17   : > { %s1003_s17 = scalar_select %p27_p6, %s881_s26, %s29_s16  }
  0x18   : > { %p1007_p10 = por %p43_p1, %p42_p9  ;;  %p639_p11 = scmp.lt.s32.totalorder %s885_s27, 2 }
  0x19   : > { %s278_s19 = sand.u32 1, %s881_s26   ;;  %s587_s15 = sshll.u32 %s885_s27, 3 }
  0x1a   : > { %p38_p12 = por %p37_p8, %p36_p7  ;;  %s586_s20 = sshll.u32 %s278_s19, 3 }
  0x1b   : > { %s286_s23 = scalar_lea.hbm %s1072_s0, %s587_s15  ;;  %s282_s29 = scalar_lea.vmem [#allocation2], %s586_s20 }
  0x1c   : > { %s288_s28 = sshll.u32 %s286_s23, 4  ;;  %s290_s10 = sshll.u32 %s282_s29, 4  ;;  %s289_s28 = int_to_ptr.hbm [resolvable:$true] %s288_s28  ;;  %s291_s10 = int_to_ptr.vmem [resolvable:$true] %s290_s10 }
  0x1d   : > { %p1017_p13 = pnand %p639_p11, %p38_p12  ;;  %s279_s12 = scalar_lea.sflag [#allocation3], %s278_s19 }
  0x1e   : > { %s813_s30 = sshra.s32 %s289_s28, 4  ;;  %s820_s16 = scalar_lea.hbm %s1072_s0, 16  ;;  %s814_s30 = int_to_ptr.hbm [resolvable:$true] %s813_s30 }
  0x1f   : > { %s815_s27 = scalar_lea.hbm %s814_s30, 8  ;;  %p817_p2 = pneg %p1017_p13 }
  0x20   : > { %p816_p0 = scmp.ne.s32.totalorder %s814_s30, %s815_s27  ;;  %p821_p6 = scmp.lt.s32.totalorder %s814_s30, %s1072_s0 }
  0x21   : > { %p822_p7 = scmp.lt.s32.totalorder %s820_s16, %s815_s27 }
  0x22   : > { %p818_p4 = pnand %p817_p2, %p816_p0 }
  0x23   : > { %p823_p8 = por %p822_p7, %p821_p6 }
  0x24   : > { %p819_p5 = pneg %p818_p4 }
  0x26   : > { %p824_p9 = pnand %p823_p8, %p819_p5 }
  0x28   : > { %827 = shalt.err (!%p824_p9)
}
  0x29   : > { %634 = dma.hbm_to_vmem [thread:$0]  (!%p1017_p13), %s289_s28, 128, %s291_s10, %s279_s12  }
  0x2a   : > { %299 = sbr.rel (%p962_p3) target bundleno = 491 (0x1eb), region = 48  ;;  %s301_s19 = sand.u32 (!%p962_p3), 1, %s877_s25  }
  0x2b   : > { %s589_s21 = sshll.u32 (!%p962_p3), %s301_s19, 3  ;;  %s302_s22 = scalar_lea.sflag (!%p962_p3), [#allocation3], %s301_s19 }
  0x2c   : > { %s305_s23 = scalar_lea.vmem (!%p962_p3), [#allocation2], %s589_s21 }
  0x2f   : > { %860 = dma.done.wait (%p1007_p10), %s302_s22, 128  }
  0x30   : > { %862 = vsyncadd (%p1007_p10), %s302_s22, 4294967168 }
  0x31   : > { %864 = dma.done.wait (%p43_p1), [#allocation5], 272  }
  0x32   : > { %866 = vsyncadd (%p43_p1), [#allocation5], 4294967024 }
  0x33   : > { %868 = dma.done.wait (%p43_p1), [#allocation8], 1024  }
  0x34   : > { %870 = vsyncadd (%p43_p1), [#allocation8], 4294966272  ;;  %v362_v0 = vld [vmem:[#allocation4 + $0x8] sm:$0xff]  ;;  %v361_v1 = vld [vmem:[#allocation4] sm:$0xff]  ;;  %vm367_vm0 = vcmask 130048   ;;  %vm400_vm1 = vcmask 261120  }
  0x35   : > { %385 = vmatpush.msra.mxu0 %v362_v0  ;;  %v360_v2 = vld [vmem:[%s305_s23] sm:$0xff]  ;;  %v394_v4 = vld [vmem:[#allocation7 + $0x10] sm:$0xff]  ;;  %p356_p1 = scmp.lt.s32.totalorder %s957_s8, 1 }
  0x36   : > { %v395_v3 = vld [vmem:[#allocation7 + $0x18] sm:$0xff]  ;;  %v393_v5 = vld [vmem:[#allocation7 + $0x8] sm:$0xff]  ;;  %v392_v6 = vld [vmem:[#allocation7] sm:$0xff] }
  0x37   : > { %386 = vmatpush.msra.mxu0 %v361_v1  ;;  %416 = vmatpush.msra.mxu1 %v395_v3  ;;  %v682_v7 = vld [vmem:[#allocation6] ss:$0 sm:$0xff]  ;;  %v427_v12 = vld [vmem:[#allocation9 + $0x10] sm:$0xff]  ;;  %v426_v13 = vld [vmem:[#allocation9 + $0x8] sm:$0xff]  ;;  %s1089_s8 = smov (!%p356_p1, %s957_s8), 1 }
  0x38   : > { %595 = vmatmul.msk.f32.vlgmr.msra.gmra.mxu0 %vm367_vm0, %v360_v2  ;;  %v428_v11 = vld [vmem:[#allocation9 + $0x18] sm:$0xff]  ;;  %v425_v14 = vld [vmem:[#allocation9] sm:$0xff]  ;;  %s594_s10 = sshll.u32 %s1089_s8, 3 }
  0x39   : > { %417 = vmatpush.msra.mxu1 %v394_v4  ;;  %448 = vmatpush.msra.mxu2 %v428_v11  ;;  %v683_v15 = vld [vmem:[%s1076_s4] ss:$0 sm:$0xff]  ;;  %s359_s30 = scalar_lea.vmem %s1079_s7, %s594_s10 }
  0x3a   : > { %v684_v19 = vld [vmem:[%s1078_s6] ss:$0 sm:$0xff] }
  0x3b   : > { %418 = vmatpush.msra.mxu1 %v393_v5  ;;  %449 = vmatpush.msra.mxu2 %v427_v12 }
  0x3d   : > { %419 = vmatpush.msra.mxu1 %v392_v6  ;;  %450 = vmatpush.msra.mxu2 %v426_v13 }
  0x3f   : > { %451 = vmatpush.msra.mxu2 %v425_v14 }
  0xb5   : > { %v388_v8 = vpop.f32.mrf.mxu0 }
  0xb6   : > { %v389_v9 = vadd.f32 %v682_v7, %v388_v8 }
  0xb8   : > { %685 = vtanh.f32 %v389_v9 }
  0xbe   : > { %v686_v10 = vpop.eup %685 }
  0xbf   : > { %596 = vmatmul.msk.f32.vlgmr.msra.gmra.mxu1 %vm400_vm1, %v686_v10 }
 0x13c   : > { %v421_v16 = vpop.f32.mrf.mxu1 }
 0x13d   : > { %v422_v17 = vadd.f32 %v683_v15, %v421_v16 }
 0x13f   : > { %687 = vtanh.f32 %v422_v17 }
 0x145   : > { %v688_v18 = vpop.eup %687 }
 0x146   : > { %597 = vmatmul.msk.f32.vlgmr.msra.gmra.mxu2 %vm400_vm1, %v688_v18 }
 0x1c9   : > { %v453_v20 = vpop.f32.mrf.mxu2 }
 0x1ca   : > { %v454_v21 = vadd.f32 %v684_v19, %v453_v20 }
 0x1cc   : > { %v459_v22 = vand.u32 2147483647, %v454_v21  ;;  %v456_v33 = vmax.f32 %v454_v21, 0.0  ;;  %vm457_vm3 = vcmp.ne.f32.partialorder %v454_v21, %v454_v21 }
 0x1ce   : > { %v460_v23 = vsub.f32 0.0, %v459_v22 }
 0x1d0   : > { %v461_v24 = vmul.f32 1.442695, %v460_v23 }
 0x1d2   : > { %689 = vpow2.f32 %v461_v24 }
 0x1d8   : > { %v690_v25 = vpop.eup %689 }
 0x1d9   : > { %v463_v26 = vadd.f32 1.0, %v690_v25  ;;  %v466_v27 = vmul.f32 -0.5, %v690_v25  ;;  %v469_v29 = vand.u32 2147483647, %v690_v25 }
 0x1db   : > { %691 = vlog2.f32 %v463_v26  ;;  %v467_v28 = vadd.f32 1.0, %v466_v27  ;;  %vm470_vm2 = vcmp.lt.f32.partialorder %v469_v29, 0.0004427343 }
 0x1dd   : > { %v468_v32 = vmul.f32 %v690_v25, %v467_v28 }
 0x1e1   : > { %v692_v30 = vpop.eup %691 }
 0x1e2   : > { %v465_v31 = vmul.f32 0.6931472, %v692_v30 }
 0x1e4   : > { %v471_v34 = vsel %vm470_vm2, %v468_v32, %v465_v31 }
 0x1e5   : > { %v472_v35 = vadd.f32 %v471_v34, %v456_v33 }
 0x1e7   : > { %v473_v36 = vsel %vm457_vm3, %v454_v21, %v472_v35 }
 0x1e8   : > { %v474_v37 = vadd.f32 1.0, %v473_v36 }
 0x1ea   : > { %475 = vst [vmem:[%s359_s30] sm:$0xff] %v474_v37 }
 0x1eb PF: > { %p19_p3 = scmp.ge.s32.totalorder %s992_s13, 4   ;;  %s1084_s24 = smov %s877_s25 }
 0x1ec   : > { %s1085_s25 = smov %s881_s26  ;;  %s1086_s26 = smov %s1003_s17 }
 0x1ed   : > { %s1087_s27 = smov %s992_s13  ;;  %21 = sbr.rel (!%p19_p3) target bundleno = 5 (0x5), region = 104 }
 0x1f2   :  { %495 = vsyncpa [#allocation3], 1 }
 0x1f3   :  { %497 = vsyncpa [#allocation3 + $0x1], 1 }
 0x1f4   :  { %498 = vsyncpa [#allocation5], 1 }
 0x1f5   :  { %499 = vsyncpa [#allocation8], 1 }

// kernel: beta_actor_forward.1
= control target key start
LH: loop header
LB: loop body
LE: loop exit
PB: predicated region body
PF: predicated region fallthrough
CT: control target
= control target key end

     0   :  { %12 = vsyncpa [#allocation3], 0  ;;  %s1072_s0 = inlined_call_operand.hbm [shape: f32[16,16], index: 0, kind: input, shape index: {}]   ;;  %s1073_s1 = inlined_call_operand.hbm [shape: f32[16,32], index: 1, kind: input, shape index: {}]   ;;  %s1074_s2 = inlined_call_operand.hbm [shape: f32[1,32], index: 2, kind: input, shape index: {}]   ;;  %s1075_s3 = inlined_call_operand.hbm [shape: f32[32,32], index: 3, kind: input, shape index: {}]   ;;  %s1076_s4 = inlined_call_operand.vmem [shape: f32[1,32], index: 4, kind: input, shape index: {}]   ;;  %s1077_s5 = inlined_call_operand.hbm [shape: f32[32,128], index: 5, kind: input, shape index: {}]   ;;  %s1078_s6 = inlined_call_operand.vmem [shape: f32[1,128], index: 6, kind: input, shape index: {}]   ;;  %s1079_s7 = inlined_call_operand.vmem [shape: f32[16,128], index: 7, kind: output, shape index: {}]  }
   0x1   :  { %14 = vsyncpa [#allocation3 + $0x1], 0 }
   0x2   :  { %15 = vsyncpa [#allocation5], 0 }
   0x3   :  { %16 = vsyncpa [#allocation8], 0  ;;  %s933_s24 = smov 0   ;;  %s935_s25 = smov 0  }
   0x4   :  { %s937_s26 = smov 0   ;;  %s939_s27 = smov 0  }
   0x5 LB: > { %s216_s30 = sshll.u32 %s1073_s1, 4  ;;  %s957_s8 = sadd.s32 4294967295, %s885_s27   ;;  %s885_s27 = sphi %s939_s27, %s1087_s27   ;;  %s881_s26 = sphi %s937_s26, %s1086_s26   ;;  %s877_s25 = sphi %s935_s25, %s1085_s25   ;;  %s873_s24 = sphi %s933_s24, %s1084_s24   ;;  %s217_s30 = int_to_ptr.hbm [resolvable:$true] %s216_s30 }
   0x6   : > { %p580_p0 = scmp.ge.s32.totalorder %s885_s27, 1  ;;  %p43_p1 = scmp.eq.s32.totalorder %s957_s8, 0 }
   0x7   : > { %p205_p2 = scmp.lt.s32.totalorder %s885_s27, 3  ;;  %s887_s10 = smov [#allocation4]  }
   0x8   : > { %s218_s11 = sshll.u32 %s887_s10, 4  ;;  %s242_s14 = sshll.u32 %s1075_s3, 4  ;;  %s219_s11 = int_to_ptr.vmem [resolvable:$true] %s218_s11  ;;  %s243_s14 = int_to_ptr.hbm [resolvable:$true] %s242_s14 }
   0x9   : > { %p962_p3 = pnand %p580_p0, %p205_p2  ;;  %s231_s18 = sshll.u32 %s1074_s2, 4  ;;  %s232_s18 = int_to_ptr.hbm [resolvable:$true] %s231_s18 }
   0xa   : > { %s888_s19 = smov [#allocation7]   ;;  %s889_s21 = smov 128  }
   0xb   : > { %p618_p4 = pneg %p962_p3  ;;  %s244_s20 = sshll.u32 %s888_s19, 4  ;;  %s245_s20 = int_to_ptr.vmem [resolvable:$true] %s244_s20 }
   0xc   : > { %s890_s22 = smov 8   ;;  %s259_s29 = sshll.u32 %s1077_s5, 4  ;;  %s260_s29 = int_to_ptr.hbm [resolvable:$true] %s259_s29 }
   0xd   : > { %p973_p5 = pnand %p618_p4, %p43_p1  ;;  %s891_s10 = smov [#allocation6]  }
   0xe   : > { %s233_s12 = sshll.u32 %s891_s10, 4  ;;  %s992_s13 = sadd.s32 1, %s885_s27   ;;  %s234_s12 = int_to_ptr.vmem [resolvable:$true] %s233_s12 }
   0xf   : > { %621 = dma.hbm_to_vmem [thread:$0]  (!%p973_p5), %s217_s30, 256, %s219_s11, [#allocation5], %s889_s21, %s889_s21, %s890_s22  }
  0x10   : > { %627 = dma.hbm_to_vmem [thread:$0]  (!%p973_p5), %s243_s14, 512, %s245_s20, [#allocation8], %s889_s21, %s889_s21, %s890_s22  }
  0x11   : > { %624 = dma.hbm_to_vmem [thread:$0]  (!%p973_p5), %s232_s18, 16, %s234_s12, [#allocation5]  }
  0x12   : > { %s892_s30 = smov [#allocation9]   ;;  %s26_s14 = ssub.s32 %s885_s27, %s992_s13 }
  0x13   : > { %s261_s11 = sshll.u32 %s892_s30, 4  ;;  %s29_s16 = sadd.s32 1, %s881_s26  ;;  %s262_s11 = int_to_ptr.vmem [resolvable:$true] %s261_s11 }
  0x14   : > { %630 = dma.hbm_to_vmem [thread:$0]  (!%p973_p5), %s260_s29, 512, %s262_s11, [#allocation8], %s889_s21, %s889_s21, %s890_s22  }
  0x15   : > { %p27_p6 = scmp.eq.s32.totalorder %s26_s14, 0  ;;  %p36_p7 = scmp.ne.s32.totalorder %s881_s26, %s877_s25 }
  0x16   : > { %p37_p8 = scmp.eq.s32.totalorder %s885_s27, 0  ;;  %p42_p9 = scmp.ne.s32.totalorder %s877_s25, %s873_s24 }
  0x17   : > { %s1003_s17 = scalar_select %p27_p6, %s881_s26, %s29_s16  }
  0x18   : > { %p1007_p10 = por %p43_p1, %p42_p9  ;;  %p639_p11 = scmp.lt.s32.totalorder %s885_s27, 2 }
  0x19   : > { %s278_s19 = sand.u32 1, %s881_s26   ;;  %s587_s15 = sshll.u32 %s885_s27, 3 }
  0x1a   : > { %p38_p12 = por %p37_p8, %p36_p7  ;;  %s586_s20 = sshll.u32 %s278_s19, 3 }
  0x1b   : > { %s286_s23 = scalar_lea.hbm %s1072_s0, %s587_s15  ;;  %s282_s29 = scalar_lea.vmem [#allocation2], %s586_s20 }
  0x1c   : > { %s288_s28 = sshll.u32 %s286_s23, 4  ;;  %s290_s10 = sshll.u32 %s282_s29, 4  ;;  %s289_s28 = int_to_ptr.hbm [resolvable:$true] %s288_s28  ;;  %s291_s10 = int_to_ptr.vmem [resolvable:$true] %s290_s10 }
  0x1d   : > { %p1017_p13 = pnand %p639_p11, %p38_p12  ;;  %s279_s12 = scalar_lea.sflag [#allocation3], %s278_s19 }
  0x1e   : > { %s813_s30 = sshra.s32 %s289_s28, 4  ;;  %s820_s16 = scalar_lea.hbm %s1072_s0, 16  ;;  %s814_s30 = int_to_ptr.hbm [resolvable:$true] %s813_s30 }
  0x1f   : > { %s815_s27 = scalar_lea.hbm %s814_s30, 8  ;;  %p817_p2 = pneg %p1017_p13 }
  0x20   : > { %p816_p0 = scmp.ne.s32.totalorder %s814_s30, %s815_s27  ;;  %p821_p6 = scmp.lt.s32.totalorder %s814_s30, %s1072_s0 }
  0x21   : > { %p822_p7 = scmp.lt.s32.totalorder %s820_s16, %s815_s27 }
  0x22   : > { %p818_p4 = pnand %p817_p2, %p816_p0 }
  0x23   : > { %p823_p8 = por %p822_p7, %p821_p6 }
  0x24   : > { %p819_p5 = pneg %p818_p4 }
  0x26   : > { %p824_p9 = pnand %p823_p8, %p819_p5 }
  0x28   : > { %827 = shalt.err (!%p824_p9)
}
  0x29   : > { %634 = dma.hbm_to_vmem [thread:$0]  (!%p1017_p13), %s289_s28, 128, %s291_s10, %s279_s12  }
  0x2a   : > { %299 = sbr.rel (%p962_p3) target bundleno = 491 (0x1eb), region = 48  ;;  %s301_s19 = sand.u32 (!%p962_p3), 1, %s877_s25  }
  0x2b   : > { %s589_s21 = sshll.u32 (!%p962_p3), %s301_s19, 3  ;;  %s302_s22 = scalar_lea.sflag (!%p962_p3), [#allocation3], %s301_s19 }
  0x2c   : > { %s305_s23 = scalar_lea.vmem (!%p962_p3), [#allocation2], %s589_s21 }
  0x2f   : > { %860 = dma.done.wait (%p1007_p10), %s302_s22, 128  }
  0x30   : > { %862 = vsyncadd (%p1007_p10), %s302_s22, 4294967168 }
  0x31   : > { %864 = dma.done.wait (%p43_p1), [#allocation5], 272  }
  0x32   : > { %866 = vsyncadd (%p43_p1), [#allocation5], 4294967024 }
  0x33   : > { %868 = dma.done.wait (%p43_p1), [#allocation8], 1024  }
  0x34   : > { %870 = vsyncadd (%p43_p1), [#allocation8], 4294966272  ;;  %v362_v0 = vld [vmem:[#allocation4 + $0x8] sm:$0xff]  ;;  %v361_v1 = vld [vmem:[#allocation4] sm:$0xff]  ;;  %vm367_vm0 = vcmask 130048   ;;  %vm400_vm1 = vcmask 261120  }
  0x35   : > { %385 = vmatpush.msra.mxu0 %v362_v0  ;;  %v360_v2 = vld [vmem:[%s305_s23] sm:$0xff]  ;;  %v394_v4 = vld [vmem:[#allocation7 + $0x10] sm:$0xff]  ;;  %p356_p1 = scmp.lt.s32.totalorder %s957_s8, 1 }
  0x36   : > { %v395_v3 = vld [vmem:[#allocation7 + $0x18] sm:$0xff]  ;;  %v393_v5 = vld [vmem:[#allocation7 + $0x8] sm:$0xff]  ;;  %v392_v6 = vld [vmem:[#allocation7] sm:$0xff] }
  0x37   : > { %386 = vmatpush.msra.mxu0 %v361_v1  ;;  %416 = vmatpush.msra.mxu1 %v395_v3  ;;  %v682_v7 = vld [vmem:[#allocation6] ss:$0 sm:$0xff]  ;;  %v427_v12 = vld [vmem:[#allocation9 + $0x10] sm:$0xff]  ;;  %v426_v13 = vld [vmem:[#allocation9 + $0x8] sm:$0xff]  ;;  %s1089_s8 = smov (!%p356_p1, %s957_s8), 1 }
  0x38   : > { %595 = vmatmul.msk.f32.vlgmr.msra.gmra.mxu0 %vm367_vm0, %v360_v2  ;;  %v428_v11 = vld [vmem:[#allocation9 + $0x18] sm:$0xff]  ;;  %v425_v14 = vld [vmem:[#allocation9] sm:$0xff]  ;;  %s594_s10 = sshll.u32 %s1089_s8, 3 }
  0x39   : > { %417 = vmatpush.msra.mxu1 %v394_v4  ;;  %448 = vmatpush.msra.mxu2 %v428_v11  ;;  %v683_v15 = vld [vmem:[%s1076_s4] ss:$0 sm:$0xff]  ;;  %s359_s30 = scalar_lea.vmem %s1079_s7, %s594_s10 }
  0x3a   : > { %v684_v19 = vld [vmem:[%s1078_s6] ss:$0 sm:$0xff] }
  0x3b   : > { %418 = vmatpush.msra.mxu1 %v393_v5  ;;  %449 = vmatpush.msra.mxu2 %v427_v12 }
  0x3d   : > { %419 = vmatpush.msra.mxu1 %v392_v6  ;;  %450 = vmatpush.msra.mxu2 %v426_v13 }
  0x3f   : > { %451 = vmatpush.msra.mxu2 %v425_v14 }
  0xb5   : > { %v388_v8 = vpop.f32.mrf.mxu0 }
  0xb6   : > { %v389_v9 = vadd.f32 %v682_v7, %v388_v8 }
  0xb8   : > { %685 = vtanh.f32 %v389_v9 }
  0xbe   : > { %v686_v10 = vpop.eup %685 }
  0xbf   : > { %596 = vmatmul.msk.f32.vlgmr.msra.gmra.mxu1 %vm400_vm1, %v686_v10 }
 0x13c   : > { %v421_v16 = vpop.f32.mrf.mxu1 }
 0x13d   : > { %v422_v17 = vadd.f32 %v683_v15, %v421_v16 }
 0x13f   : > { %687 = vtanh.f32 %v422_v17 }
 0x145   : > { %v688_v18 = vpop.eup %687 }
 0x146   : > { %597 = vmatmul.msk.f32.vlgmr.msra.gmra.mxu2 %vm400_vm1, %v688_v18 }
 0x1c9   : > { %v453_v20 = vpop.f32.mrf.mxu2 }
 0x1ca   : > { %v454_v21 = vadd.f32 %v684_v19, %v453_v20 }
 0x1cc   : > { %v459_v22 = vand.u32 2147483647, %v454_v21  ;;  %v456_v33 = vmax.f32 %v454_v21, 0.0  ;;  %vm457_vm3 = vcmp.ne.f32.partialorder %v454_v21, %v454_v21 }
 0x1ce   : > { %v460_v23 = vsub.f32 0.0, %v459_v22 }
 0x1d0   : > { %v461_v24 = vmul.f32 1.442695, %v460_v23 }
 0x1d2   : > { %689 = vpow2.f32 %v461_v24 }
 0x1d8   : > { %v690_v25 = vpop.eup %689 }
 0x1d9   : > { %v463_v26 = vadd.f32 1.0, %v690_v25  ;;  %v466_v27 = vmul.f32 -0.5, %v690_v25  ;;  %v469_v29 = vand.u32 2147483647, %v690_v25 }
 0x1db   : > { %691 = vlog2.f32 %v463_v26  ;;  %v467_v28 = vadd.f32 1.0, %v466_v27  ;;  %vm470_vm2 = vcmp.lt.f32.partialorder %v469_v29, 0.0004427343 }
 0x1dd   : > { %v468_v32 = vmul.f32 %v690_v25, %v467_v28 }
 0x1e1   : > { %v692_v30 = vpop.eup %691 }
 0x1e2   : > { %v465_v31 = vmul.f32 0.6931472, %v692_v30 }
 0x1e4   : > { %v471_v34 = vsel %vm470_vm2, %v468_v32, %v465_v31 }
 0x1e5   : > { %v472_v35 = vadd.f32 %v471_v34, %v456_v33 }
 0x1e7   : > { %v473_v36 = vsel %vm457_vm3, %v454_v21, %v472_v35 }
 0x1e8   : > { %v474_v37 = vadd.f32 1.0, %v473_v36 }
 0x1ea   : > { %475 = vst [vmem:[%s359_s30] sm:$0xff] %v474_v37 }
 0x1eb PF: > { %p19_p3 = scmp.ge.s32.totalorder %s992_s13, 4   ;;  %s1084_s24 = smov %s877_s25 }
 0x1ec   : > { %s1085_s25 = smov %s881_s26  ;;  %s1086_s26 = smov %s1003_s17 }
 0x1ed   : > { %s1087_s27 = smov %s992_s13  ;;  %21 = sbr.rel (!%p19_p3) target bundleno = 5 (0x5), region = 104 }
 0x1f2   :  { %495 = vsyncpa [#allocation3], 1 }
 0x1f3   :  { %497 = vsyncpa [#allocation3 + $0x1], 1 }
 0x1f4   :  { %498 = vsyncpa [#allocation5], 1 }
 0x1f5   :  { %499 = vsyncpa [#allocation8], 1 }

</bundles_post_ra>
